<compile_context>
chip_gen: v7x
topology: tpu7x:2x2x1
jax: 0.10.0
libtpu: 0.0.40
codegen_flags: <defaults>
</compile_context>

<pallas_src>
import functools

import jax
import jax.numpy as jnp
from jax.experimental import pallas as pl
from jax.experimental.pallas import tpu as pltpu


# ---------------------------------------------------------------------------
# Model dimensions
# ---------------------------------------------------------------------------
L_IN = 15                     # fc_in input features
L_HID = 36                    # fc_in output / conv length
N_CH, KW = 4, 3               # conv channels / kernel width
L_POOL = 18                   # length after MaxPool1d(2)
F_CONV = N_CH * L_HID         # 144
F_FLAT = N_CH * L_POOL        # 72
PAD = 128                     # lane-aligned width of each pooled-conv half
H_OUT, N_OUT = 32, 6
BN_EPS = 1e-5


# ---------------------------------------------------------------------------
# Pallas kernel: whole forward pass for one batch tile.
# ---------------------------------------------------------------------------
def net_kernel(x_ref, w_in_ref, c_ref, w1_ref, w2_ref, bias_ref, out_ref):
    bias = bias_ref[...]                                            # (4, 256) f32

    # fc_in: Linear(15,36) + ReLU  (bias added on the VPU, hidden under the MXU)
    xb = x_ref[...].astype(jnp.bfloat16)                            # (TB, 15)
    h = jnp.dot(xb, w_in_ref[...], preferred_element_type=jnp.float32)
    h = jnp.maximum(h + bias[0, :L_HID], 0.0)                       # (TB, 36) f32

    # Conv1d(1,4,3,pad=1) + BatchNorm (folded) as one banded matmul whose columns
    # are permuted into [even-time | odd-time] 128-lane halves.
    y = jnp.dot(h.astype(jnp.bfloat16), c_ref[...],
                preferred_element_type=jnp.float32) + bias[1, :]
    y = jnp.maximum(y, 0.0)                                         # (TB, 256)

    # MaxPool1d(2): lane-aligned elementwise max -> already the flattened (B,72) view
    flat = jnp.maximum(y[:, :PAD], y[:, PAD:])                      # (TB, 128)

    # fc_out: Linear(72,32)+ReLU, Linear(32,6)+Sigmoid  (W1 zero-padded to 128 rows)
    z = jnp.dot(flat.astype(jnp.bfloat16), w1_ref[...],
                preferred_element_type=jnp.float32) + bias[2, :H_OUT]
    z = jnp.maximum(z, 0.0)                                         # (TB, 32)
    logits = jnp.dot(z.astype(jnp.bfloat16), w2_ref[...],
                     preferred_element_type=jnp.float32) + bias[3, :N_OUT]
    # Exact sigmoid via tanh: single EUP op, bounded in [0, 1].
    out_ref[...] = 0.5 * (jnp.tanh(0.5 * logits) + 1.0)


# ---------------------------------------------------------------------------
# Parameter reformatting (one-time glue, done in the wrapper)
# ---------------------------------------------------------------------------
def build_operands(params):
    (w_in, b_in, conv_w, conv_b, bn_gamma, bn_beta, bn_mean, bn_var,
     w1, b1, w2, b2) = params

    # Conv1d(1,4,3,padding=1) as a banded (36,36) matrix per channel, with the
    # inference-mode BatchNorm affine folded in.
    s = jnp.arange(L_HID)[:, None]
    t = jnp.arange(L_HID)[None, :]
    d = s - t

    def band(w3):
        return (jnp.where(d == -1, w3[0], 0.0)
                + jnp.where(d == 0, w3[1], 0.0)
                + jnp.where(d == 1, w3[2], 0.0)).astype(jnp.float32)

    bn_scale = bn_gamma / jnp.sqrt(bn_var + BN_EPS)
    bn_shift = bn_beta - bn_mean * bn_scale
    c_full = jnp.concatenate(
        [band(conv_w[c, 0]) * bn_scale[c] for c in range(N_CH)], axis=1)  # (36, 144)
    col_bias = conv_b * bn_scale + bn_shift                               # (4,)

    # Column permutation: pooled order (c*18 + p); even times in half 0, odd times
    # in half 1, each half zero-padded to 128 lanes.
    j = jnp.arange(F_FLAT)
    even_src = (j // L_POOL) * L_HID + 2 * (j % L_POOL)
    odd_src = even_src + 1
    pad_cols = PAD - F_FLAT
    c_perm = jnp.concatenate(
        [jnp.pad(jnp.take(c_full, even_src, axis=1), ((0, 0), (0, pad_cols))),
         jnp.pad(jnp.take(c_full, odd_src, axis=1), ((0, 0), (0, pad_cols)))],
        axis=1)                                                           # (36, 256)
    half_bias = jnp.pad(jnp.repeat(col_bias, L_POOL), (0, pad_cols))      # (128,)
    v_bias = jnp.concatenate([half_bias, half_bias])                      # (256,)

    w1_pad = jnp.pad(w1, ((0, PAD - F_FLAT), (0, 0)))                     # (128, 32)

    bias_pack = jnp.stack([
        jnp.pad(b_in.reshape(-1), (0, 2 * PAD - L_HID)),                  # fc_in bias
        v_bias,                                                           # conv+BN bias
        jnp.pad(b1.reshape(-1), (0, 2 * PAD - H_OUT)),                    # fc_out[0] bias
        jnp.pad(b2.reshape(-1), (0, 2 * PAD - N_OUT)),                    # fc_out[2] bias
    ]).astype(jnp.float32)                                                # (4, 256)

    bf = jnp.bfloat16
    return (w_in.astype(bf), c_perm.astype(bf), w1_pad.astype(bf),
            w2.astype(bf), bias_pack)


def _cdiv(a, b):
    return -(-a // b)


def _round_up(n, m):
    return ((n + m - 1) // m) * m


@functools.partial(jax.jit, static_argnames=("tb",))
def net_forward(x, params, tb=2048):
    batch = x.shape[0]
    x2 = x.reshape(batch, -1)                                      # input.view(B, -1), native dtype
    assert x2.shape[1] == L_IN

    # Balanced batch tiling: minimal padding; for batch >= 64 force an even number
    # of >= 2 grid steps so v7x's two TensorCores both get work ("parallel" axis).
    n_steps = _cdiv(batch, tb)
    if batch >= 64 and n_steps % 2 == 1:
        n_steps += 1
    eff_tb = _round_up(_cdiv(batch, n_steps), 8)
    padded = _round_up(batch, eff_tb)
    if padded != batch:
        x2 = jnp.pad(x2, ((0, padded - batch), (0, 0)))

    w_in_b, c_perm, w1_p, w2_b, bias_pack = build_operands(params)

    def rep(shape):  # replicated operand: constant index_map -> pipeliner elides re-DMA
        return pl.BlockSpec(shape, lambda i: (0,) * len(shape))

    out = pl.pallas_call(
        net_kernel,
        out_shape=jax.ShapeDtypeStruct((padded, N_OUT), jnp.float32),
        grid_spec=pltpu.PrefetchScalarGridSpec(
            num_scalar_prefetch=0,
            grid=(padded // eff_tb,),
            in_specs=[
                pl.BlockSpec((eff_tb, L_IN), lambda i: (i, 0)),       # x tile
                rep((L_IN, L_HID)),                                   # W_in
                rep((L_HID, 2 * PAD)),                                # conv+BN banded, permuted
                rep((PAD, H_OUT)),                                    # W1 (zero-padded rows)
                rep((H_OUT, N_OUT)),                                  # W2
                rep((4, 2 * PAD)),                                    # packed biases
            ],
            out_specs=pl.BlockSpec((eff_tb, N_OUT), lambda i: (i, 0)),
        ),
        compiler_params=pltpu.CompilerParams(
            dimension_semantics=("parallel",),
            vmem_limit_bytes=32 * 1024 * 1024,
        ),
    )(x2, w_in_b, c_perm, w1_p, w2_b, bias_pack)
    return out[:batch]


# ---------------------------------------------------------------------------
# Pure-JAX reference (mirrors the PyTorch forward literally, in f32)
# ---------------------------------------------------------------------------
def ref_forward(x, params):
    (w_in, b_in, conv_w, conv_b, bn_gamma, bn_beta, bn_mean, bn_var,
     w1, b1, w2, b2) = params
    batch = x.shape[0]
    x2 = x.reshape(batch, -1)
    h = jnp.maximum(x2 @ w_in + b_in, 0.0)                       # (B, 36)
    hp = jnp.pad(h, ((0, 0), (1, 1)))                            # Conv1d padding=1
    y = jnp.stack(
        [sum(conv_w[c, 0, k] * hp[:, k:k + L_HID] for k in range(KW)) + conv_b[c]
         for c in range(N_CH)], axis=1)                          # (B, 4, 36)
    y = ((y - bn_mean[None, :, None]) / jnp.sqrt(bn_var + BN_EPS)[None, :, None]
         * bn_gamma[None, :, None] + bn_beta[None, :, None])
    y = jnp.maximum(y, 0.0)
    y = y.reshape(batch, N_CH, L_POOL, 2).max(-1)                # MaxPool1d(2)
    flat = y.reshape(batch, -1)                                  # (B, 72)
    z = jnp.maximum(flat @ w1 + b1, 0.0)
    return jax.nn.sigmoid(z @ w2 + b2)


# ---------------------------------------------------------------------------
if __name__ == "__main__":
    key = jax.random.PRNGKey(0)
    ks = jax.random.split(key, 12)

    def u(k, shape, lo=-0.3, hi=0.3):
        return jax.random.uniform(k, shape, jnp.float32, lo, hi)

    params = (
        u(ks[0], (L_IN, L_HID)),              # fc_in weight (in, out)
        u(ks[1], (1, L_HID)),                 # fc_in bias
        u(ks[2], (N_CH, 1, KW)),              # Conv1d weight (out_ch, in_ch, k)
        u(ks[3], (N_CH,)),                    # Conv1d bias
        u(ks[4], (N_CH,), 0.5, 1.5),          # BN gamma
        u(ks[5], (N_CH,)),                    # BN beta
        u(ks[6], (N_CH,)),                    # BN running_mean
        u(ks[7], (N_CH,), 0.5, 1.5),          # BN running_var
        u(ks[8], (F_FLAT, H_OUT)),            # fc_out[0] weight
        u(ks[9], (1, H_OUT)),                 # fc_out[0] bias
        u(ks[10], (H_OUT, N_OUT)),            # fc_out[2] weight
        u(ks[11], (1, N_OUT)),                # fc_out[2] bias
    )

    x = jax.random.normal(jax.random.PRNGKey(1), (32, L_IN), jnp.float32)

    ref = ref_forward(x, params)

    # Default path (batch < 64: single balanced tile, grid=(1,)).
    out = jax.block_until_ready(net_forward(x, params))
    assert out.shape == (32, N_OUT)
    assert jnp.allclose(out, ref, atol=5e-2), float(jnp.abs(out - ref).max())

    # Multi-step grid path (exercises tiling / index_map with grid=(4,)).
    out_small = jax.block_until_ready(net_forward(x, params, tb=8))
    assert jnp.allclose(out_small, ref, atol=5e-2), float(jnp.abs(out_small - ref).max())

    print("KERNEL_OK")
</pallas_src>

<mosaic_0001>
module attributes {stable_mosaic.version = 11 : i64} {
  func.func @net_kernel(%arg0: i32, %arg1: memref<32x15xf32, #tpu.memory_space<vmem>>, %arg2: memref<15x36xbf16, #tpu.memory_space<vmem>>, %arg3: memref<36x256xbf16, #tpu.memory_space<vmem>>, %arg4: memref<128x32xbf16, #tpu.memory_space<vmem>>, %arg5: memref<32x6xbf16, #tpu.memory_space<vmem>>, %arg6: memref<4x256xf32, #tpu.memory_space<vmem>>, %arg7: memref<32x6xf32, #tpu.memory_space<vmem>>) attributes {dimension_semantics = [#tpu.dimension_semantics<parallel>], iteration_bounds = array<i64: 1>, scalar_prefetch = 0 : i64, scratch_operands = 0 : i64, tpu.core_type = #tpu.core_type<tc>, window_params = [{transform_indices = @transform_0, window_bounds = array<i64: 32, 15>}, {pipeline_mode = #tpu.pipeline_mode<synchronous>, transform_indices = @transform_1, window_bounds = array<i64: 15, 36>}, {pipeline_mode = #tpu.pipeline_mode<synchronous>, transform_indices = @transform_2, window_bounds = array<i64: 36, 256>}, {pipeline_mode = #tpu.pipeline_mode<synchronous>, transform_indices = @transform_3, window_bounds = array<i64: 128, 32>}, {pipeline_mode = #tpu.pipeline_mode<synchronous>, transform_indices = @transform_4, window_bounds = array<i64: 32, 6>}, {pipeline_mode = #tpu.pipeline_mode<synchronous>, transform_indices = @transform_5, window_bounds = array<i64: 4, 256>}, {transform_indices = @transform_6, window_bounds = array<i64: 32, 6>}]} {
    %c0 = arith.constant 0 : index
    %c0_0 = arith.constant 0 : index
    %0 = vector.load %arg6[%c0, %c0_0] : memref<4x256xf32, #tpu.memory_space<vmem>>, vector<4x256xf32>
    %c0_1 = arith.constant 0 : index
    %c0_2 = arith.constant 0 : index
    %1 = vector.load %arg1[%c0_1, %c0_2] : memref<32x15xf32, #tpu.memory_space<vmem>>, vector<32x15xf32>
    %2 = arith.truncf %1 : vector<32x15xf32> to vector<32x15xbf16>
    %c0_3 = arith.constant 0 : index
    %c0_4 = arith.constant 0 : index
    %3 = vector.load %arg2[%c0_3, %c0_4] : memref<15x36xbf16, #tpu.memory_space<vmem>>, vector<15x36xbf16>
    %cst = arith.constant dense<0.000000e+00> : vector<32x36xf32>
    %4 = tpu.matmul %2, %3, %cst {dimension_numbers = #tpu.dot_dimension_numbers<[1], [0], [0], [1], [0, 0, 1, 1], [], []>} : vector<32x15xbf16>, vector<15x36xbf16>, vector<32x36xf32> -> vector<32x36xf32>
    %5 = vector.extract_strided_slice %0 {offsets = [0, 0], sizes = [1, 36], strides = [1, 1]} : vector<4x256xf32> to vector<1x36xf32>
    %6 = vector.shape_cast %5 : vector<1x36xf32> to vector<36xf32>
    %7 = vector.shape_cast %6 : vector<36xf32> to vector<1x36xf32>
    %8 = vector.broadcast %7 : vector<1x36xf32> to vector<32x36xf32>
    %9 = arith.addf %4, %8 : vector<32x36xf32>
    %cst_5 = arith.constant 0.000000e+00 : f32
    %10 = vector.broadcast %cst_5 : f32 to vector<32x36xf32>
    %11 = arith.maximumf %9, %10 : vector<32x36xf32>
    %12 = arith.truncf %11 : vector<32x36xf32> to vector<32x36xbf16>
    %c0_6 = arith.constant 0 : index
    %c0_7 = arith.constant 0 : index
    %13 = vector.load %arg3[%c0_6, %c0_7] : memref<36x256xbf16, #tpu.memory_space<vmem>>, vector<36x256xbf16>
    %cst_8 = arith.constant dense<0.000000e+00> : vector<32x256xf32>
    %14 = tpu.matmul %12, %13, %cst_8 {dimension_numbers = #tpu.dot_dimension_numbers<[1], [0], [0], [1], [0, 0, 1, 1], [], []>} : vector<32x36xbf16>, vector<36x256xbf16>, vector<32x256xf32> -> vector<32x256xf32>
    %15 = vector.extract_strided_slice %0 {offsets = [1, 0], sizes = [1, 256], strides = [1, 1]} : vector<4x256xf32> to vector<1x256xf32>
    %16 = vector.shape_cast %15 : vector<1x256xf32> to vector<256xf32>
    %17 = vector.shape_cast %16 : vector<256xf32> to vector<1x256xf32>
    %18 = vector.broadcast %17 : vector<1x256xf32> to vector<32x256xf32>
    %19 = arith.addf %14, %18 : vector<32x256xf32>
    %cst_9 = arith.constant 0.000000e+00 : f32
    %20 = vector.broadcast %cst_9 : f32 to vector<32x256xf32>
    %21 = arith.maximumf %19, %20 : vector<32x256xf32>
    %22 = vector.extract_strided_slice %21 {offsets = [0, 0], sizes = [32, 128], strides = [1, 1]} : vector<32x256xf32> to vector<32x128xf32>
    %23 = vector.extract_strided_slice %21 {offsets = [0, 128], sizes = [32, 128], strides = [1, 1]} : vector<32x256xf32> to vector<32x128xf32>
    %24 = arith.maximumf %22, %23 : vector<32x128xf32>
    %25 = arith.truncf %24 : vector<32x128xf32> to vector<32x128xbf16>
    %c0_10 = arith.constant 0 : index
    %c0_11 = arith.constant 0 : index
    %26 = vector.load %arg4[%c0_10, %c0_11] : memref<128x32xbf16, #tpu.memory_space<vmem>>, vector<128x32xbf16>
    %cst_12 = arith.constant dense<0.000000e+00> : vector<32x32xf32>
    %27 = tpu.matmul %25, %26, %cst_12 {dimension_numbers = #tpu.dot_dimension_numbers<[1], [0], [0], [1], [0, 0, 1, 1], [], []>} : vector<32x128xbf16>, vector<128x32xbf16>, vector<32x32xf32> -> vector<32x32xf32>
    %28 = vector.extract_strided_slice %0 {offsets = [2, 0], sizes = [1, 32], strides = [1, 1]} : vector<4x256xf32> to vector<1x32xf32>
    %29 = vector.shape_cast %28 : vector<1x32xf32> to vector<32xf32>
    %30 = vector.shape_cast %29 : vector<32xf32> to vector<1x32xf32>
    %31 = vector.broadcast %30 : vector<1x32xf32> to vector<32x32xf32>
    %32 = arith.addf %27, %31 : vector<32x32xf32>
    %cst_13 = arith.constant 0.000000e+00 : f32
    %33 = vector.broadcast %cst_13 : f32 to vector<32x32xf32>
    %34 = arith.maximumf %32, %33 : vector<32x32xf32>
    %35 = arith.truncf %34 : vector<32x32xf32> to vector<32x32xbf16>
    %c0_14 = arith.constant 0 : index
    %c0_15 = arith.constant 0 : index
    %36 = vector.load %arg5[%c0_14, %c0_15] : memref<32x6xbf16, #tpu.memory_space<vmem>>, vector<32x6xbf16>
    %cst_16 = arith.constant dense<0.000000e+00> : vector<32x6xf32>
    %37 = tpu.matmul %35, %36, %cst_16 {dimension_numbers = #tpu.dot_dimension_numbers<[1], [0], [0], [1], [0, 0, 1, 1], [], []>} : vector<32x32xbf16>, vector<32x6xbf16>, vector<32x6xf32> -> vector<32x6xf32>
    %38 = vector.extract_strided_slice %0 {offsets = [3, 0], sizes = [1, 6], strides = [1, 1]} : vector<4x256xf32> to vector<1x6xf32>
    %39 = vector.shape_cast %38 : vector<1x6xf32> to vector<6xf32>
    %40 = vector.shape_cast %39 : vector<6xf32> to vector<1x6xf32>
    %41 = vector.broadcast %40 : vector<1x6xf32> to vector<32x6xf32>
    %42 = arith.addf %37, %41 : vector<32x6xf32>
    %cst_17 = arith.constant 5.000000e-01 : f32
    %43 = vector.broadcast %cst_17 : f32 to vector<32x6xf32>
    %44 = arith.mulf %43, %42 : vector<32x6xf32>
    %45 = math.tanh %44 : vector<32x6xf32>
    %cst_18 = arith.constant 1.000000e+00 : f32
    %46 = vector.broadcast %cst_18 : f32 to vector<32x6xf32>
    %47 = arith.addf %45, %46 : vector<32x6xf32>
    %cst_19 = arith.constant 5.000000e-01 : f32
    %48 = vector.broadcast %cst_19 : f32 to vector<32x6xf32>
    %49 = arith.mulf %48, %47 : vector<32x6xf32>
    %c0_20 = arith.constant 0 : index
    %c0_21 = arith.constant 0 : index
    %50 = vector.load %arg7[%c0_20, %c0_21] : memref<32x6xf32, #tpu.memory_space<vmem>>, vector<32x6xf32>
    tpu.vector_store %arg7[%c0_20, %c0_21], %49 {strides = array<i32>} : memref<32x6xf32, #tpu.memory_space<vmem>>, vector<32x6xf32>,
    return
  }
  func.func @transform_0(%arg0: i32) -> (i32, i32) {
    %c0_i32 = arith.constant 0 : i32
    %c0_i32_0 = arith.constant 0 : i32
    return %arg0, %c0_i32 : i32, i32
  }
  func.func @transform_1(%arg0: i32) -> (i32, i32) {
    %c0_i32 = arith.constant 0 : i32
    %c0_i32_0 = arith.constant 0 : i32
    %c0_i32_1 = arith.constant 0 : i32
    return %c0_i32, %c0_i32_0 : i32, i32
  }
  func.func @transform_2(%arg0: i32) -> (i32, i32) {
    %c0_i32 = arith.constant 0 : i32
    %c0_i32_0 = arith.constant 0 : i32
    %c0_i32_1 = arith.constant 0 : i32
    return %c0_i32, %c0_i32_0 : i32, i32
  }
  func.func @transform_3(%arg0: i32) -> (i32, i32) {
    %c0_i32 = arith.constant 0 : i32
    %c0_i32_0 = arith.constant 0 : i32
    %c0_i32_1 = arith.constant 0 : i32
    return %c0_i32, %c0_i32_0 : i32, i32
  }
  func.func @transform_4(%arg0: i32) -> (i32, i32) {
    %c0_i32 = arith.constant 0 : i32
    %c0_i32_0 = arith.constant 0 : i32
    %c0_i32_1 = arith.constant 0 : i32
    return %c0_i32, %c0_i32_0 : i32, i32
  }
  func.func @transform_5(%arg0: i32) -> (i32, i32) {
    %c0_i32 = arith.constant 0 : i32
    %c0_i32_0 = arith.constant 0 : i32
    %c0_i32_1 = arith.constant 0 : i32
    return %c0_i32, %c0_i32_0 : i32, i32
  }
  func.func @transform_6(%arg0: i32) -> (i32, i32) {
    %c0_i32 = arith.constant 0 : i32
    %c0_i32_0 = arith.constant 0 : i32
    return %arg0, %c0_i32 : i32, i32
  }
}

</mosaic_0001>

<bundles_post_ra>
// kernel: net_forward.1
= control target key start
LH: loop header
LB: loop body
LE: loop exit
PB: predicated region body
PF: predicated region fallthrough
CT: control target
= control target key end

     0   :  { %vm49_vm0 = vcmask 1046528   ;;  %vm50_vm1 = vcmask 1047552   ;;  %v569_v1 = vmov 65535   ;;  %vm42_vm2 = vcmask 121856   ;;  %s695_s1 = inlined_call_operand.vmem [shape: bf16[15,36], index: 1, kind: input, shape index: {}]   ;;  %s696_s0 = inlined_call_operand.vmem [shape: f32[32,15], index: 0, kind: input, shape index: {}]   ;;  %s697_s2 = inlined_call_operand.vmem [shape: bf16[36,256], index: 2, kind: input, shape index: {}]   ;;  %s698_s3 = inlined_call_operand.vmem [shape: bf16[128,32], index: 3, kind: input, shape index: {}]   ;;  %s699_s5 = inlined_call_operand.vmem [shape: f32[4,256], index: 5, kind: input, shape index: {}]   ;;  %s700_s4 = inlined_call_operand.vmem [shape: bf16[32,6], index: 4, kind: input, shape index: {}]   ;;  %s701_s6 = inlined_call_operand.vmem [shape: f32[32,6], index: 6, kind: output, shape index: {}]  }
   0x1   :  { %v542_v0 = vld [vmem:[%s695_s1] sm:$0xff]   ;;  %v51_v2 = vsel %vm49_vm0, 4294967295, %v569_v1  ;;  %v26_v5 = vld [vmem:[%s696_s0 + $0x8] sm:$0xff]  ;;  %v27_v6 = vld [vmem:[%s696_s0 + $0x10] sm:$0xff]  ;;  %vm167_vm3 = vcmask 1041408   ;;  %v570_v19 = vmov 0   ;;  %v33_v23 = vlaneseq }
   0x2   :  { %v52_v3 = vsel %vm50_vm1, %v51_v2, 0  ;;  %v25_v4 = vld [vmem:[%s696_s0] sm:$0xff]  ;;  %v28_v9 = vld [vmem:[%s696_s0 + $0x18] sm:$0xff]  ;;  %v552_v21 = vld [vmem:[%s698_s3 + $0x8] sm:$0xff]   ;;  %vm160_vm4 = vcmask 293888   ;;  %vm384_vm5 = vcmask 261120  }
   0x3   :  { %v54_v7 = vand.u32 %v542_v0, %v52_v3  ;;  %v29_v8 = vpack.c.bf16 %v26_v5, %v25_v4  ;;  %v545_v10 = vld [vmem:[%s697_s2 + $0x4] ss:$8 sps:$4 sm:$0xff]   ;;  %v30_v11 = vpack.c.bf16 %v28_v9, %v27_v6  ;;  %v543_v12 = vld [vmem:[%s697_s2] ss:$8 sps:$4 sm:$0xff]   ;;  %v548_v13 = vld [vmem:[%s697_s2 + $0x14] ss:$8 sps:$4 sm:$0xff]  }
   0x4   :  { %v546_v14 = vld [vmem:[%s697_s2 + $0x10] ss:$8 sps:$4 sm:$0xff]   ;;  %v115_v15 = vld [vmem:[%s697_s2 + $0x20] sm:$0x33]  ;;  %v645_v24 = vshrl.u32 %v33_v23, 7  ;;  %v556_v44 = vld [vmem:[%s698_s3 + $0x28] sm:$0xff]  }
   0x5   :  { %506 = vmatprep.subr.bf16.mxu1 %v54_v7  ;;  %508 = vmatprep.mubr.msk.bf16.mxu1 %vm42_vm2, %v29_v8  ;;  %v473_v16 = vcombine.high %v115_v15, %v115_v15  ;;  %v472_v17 = vcombine.low %v115_v15, %v115_v15  ;;  %v551_v20 = vld [vmem:[%s698_s3] sm:$0xff]   ;;  %v553_v22 = vld [vmem:[%s698_s3 + $0x10] sm:$0xff]   ;;  %v554_v42 = vld [vmem:[%s698_s3 + $0x18] sm:$0xff]   ;;  %vm456_vm6 = vcmask 48128  }
   0x6   :  { %507 = vmatpush3.bf16.msra.mxu1 %v54_v7  ;;  %512 = vmatprep.subr.bf16.mxu0 %v551_v20  ;;  %v35_v25 = vsub.s32 0, %v645_v24  ;;  %v651_v26 = vld [vmem:[%s699_s5] sm:$0xff]  ;;  %v557_v45 = vld [vmem:[%s698_s3 + $0x30] sm:$0xff]   ;;  %v558_v46 = vld [vmem:[%s698_s3 + $0x38] sm:$0xff]   ;;  %v119_v48 = vsub.s32 1, %v645_v24  ;;  %v123_v49 = vsub.s32 5, %v645_v24 }
   0x7   :  { %174 = vmatprep.subr.bf16.mxu1 %v545_v10  ;;  %v169_v18 = vsel %vm167_vm3, %v472_v17, 0  ;;  %513 = vmatpush3.bf16.msra.mxu0 %v551_v20  ;;  %v555_v43 = vld [vmem:[%s698_s3 + $0x20] sm:$0xff]   ;;  %v560_v20 = vld [vmem:[%s700_s4 + $0x8] sm:$0xff]  }
   0x8   :  { %514 = vmatprep.subr.bf16.mxu0 %v552_v21  ;;  %v36_v27 = vrot.slane %v651_v26, %v35_v25  ;;  %v559_v47 = vld [vmem:[%s700_s4] sm:$0xff]   ;;  %v120_v50 = vrot.slane %v651_v26, %v119_v48  ;;  %v124_v51 = vrot.slane %v651_v26, %v123_v49 }
   0x9   :  { %509 = vmatmul.mubr.msk.bf16.vlgmr.msra.gmra.mrb[0].mxu1 %vm42_vm2, %v30_v11 }
   0xa   :  { %175 = vmatpush1.bf16.msra.mxu1 %v543_v12  ;;  %206 = vmatprep.mubr.bf16.mxu1 %v570_v19  ;;  %v130_v52 = vrot.slane %v120_v50, %v119_v48  ;;  %v134_v53 = vrot.slane %v124_v51, %v119_v48 }
   0xb   :  { %176 = vmatprep.subr.bf16.mxu1 %v548_v13  ;;  %515 = vmatpush3.bf16.msra.mxu0 %v552_v21  ;;  %v259_v21 = vsub.s32 2, %v645_v24 }
   0xc   :  { %516 = vmatprep.subr.bf16.mxu0 %v553_v22 }
   0xe   :  { %177 = vmatpush1.bf16.msra.mxu1 %v546_v14 }
   0xf   :  { %474 = vmatprep.subr.msk.bf16.mxu1 %vm167_vm3, %v473_v16  ;;  %517 = vmatpush3.bf16.msra.mxu0 %v553_v22  ;;  %v260_v22 = vrot.slane %v651_v26, %v259_v21 }
  0x10   :  { %518 = vmatprep.subr.bf16.mxu0 %v554_v42 }
  0x12   :  { %179 = vmatpush1.bf16.msra.mxu1 %v169_v18 }
  0x13   :  { %519 = vmatpush3.bf16.msra.mxu0 %v554_v42  ;;  %532 = vmatprep.subr.bf16.mxu1 %v559_v47 }
  0x14   :  { %520 = vmatprep.subr.bf16.mxu0 %v555_v43 }
  0x17   :  { %521 = vmatpush3.bf16.msra.mxu0 %v555_v43 }
  0x18   :  { %522 = vmatprep.subr.bf16.mxu0 %v556_v44 }
  0x1b   :  { %523 = vmatpush3.bf16.msra.mxu0 %v556_v44 }
  0x1c   :  { %524 = vmatprep.subr.bf16.mxu0 %v557_v45 }
  0x1f   :  { %525 = vmatpush3.bf16.msra.mxu0 %v557_v45 }
  0x20   :  { %526 = vmatprep.subr.bf16.mxu0 %v558_v46 }
  0x23   :  { %527 = vmatpush3.bf16.msra.mxu0 %v558_v46 }
  0xdc   :  { %v510_v28 = vpop.f32.mrb[0].mxu1 }
  0xdd   :  { %v99_v29 = vadd.f32 %v510_v28, %v36_v27  ;;  %v90_v30 = vpop.f32.mrb[1].mxu1 }
  0xde   :  { %v91_v31 = vadd.f32 %v90_v30, %v36_v27  ;;  %v511_v32 = vpop.f32.mrb[2].mxu1 }
  0xdf   :  { %v102_v33 = vadd.f32 %v511_v32, %v36_v27  ;;  %v93_v34 = vpop.f32.mrb[3].mxu1  ;;  %v107_v36 = vmax.f32 %v99_v29, 0.0 }
  0xe0   :  { %v94_v35 = vadd.f32 %v93_v34, %v36_v27  ;;  %v105_v38 = vmax.f32 %v91_v31, 0.0 }
  0xe1   :  { %v108_v37 = vmax.f32 %v102_v33, 0.0 }
  0xe2   :  { %v106_v39 = vmax.f32 %v94_v35, 0.0 }
  0xe3   :  { %v110_v40 = vpack.c.bf16 %v108_v37, %v107_v36 }
  0xe4   :  { %v109_v41 = vpack.c.bf16 %v106_v39, %v105_v38  ;;  %v370_v39 = vsub.s32 3, %v645_v24 }
  0xe6   :  { %475 = vmatmul.mubr.msk.bf16.vlgmr.msra.gmra.mrb[4].mxu1 %vm160_vm4, %v109_v41 }
  0xe7   :  { %216 = vmatprep.mubr.bf16.mxu1 %v570_v19  ;;  %533 = vmatpush3.bf16.msra.mxu1 %v559_v47 }
  0xe8   :  { %534 = vmatprep.subr.bf16.mxu1 %v560_v20 }
  0xeb   :  { %535 = vmatpush3.bf16.msra.mxu1 %v560_v20 }
  0xee   :  { %476 = vmatmul.mubr.msk.bf16.gmra.mrb[8].mxu1 %vm160_vm4, %v110_v40  ;;  %v371_v40 = vrot.slane %v651_v26, %v370_v39 }
 0x1b9   :  { %v208_v54 = vpop.f32.mrb[4].mxu1 }
 0x1ba   :  { %v209_v55 = vadd.f32 %v208_v54, %v130_v52  ;;  %v210_v56 = vpop.f32.mrb[5].mxu1 }
 0x1bb   :  { %v211_v57 = vadd.f32 %v210_v56, %v134_v53  ;;  %v212_v58 = vpop.f32.mrb[6].mxu1 }
 0x1bc   :  { %v227_v59 = vmax.f32 %v209_v55, 0.0  ;;  %v213_v60 = vadd.f32 %v212_v58, %v130_v52  ;;  %v214_v61 = vpop.f32.mrb[7].mxu1 }
 0x1bd   :  { %v228_v62 = vmax.f32 %v211_v57, 0.0  ;;  %v215_v63 = vadd.f32 %v214_v61, %v134_v53 }
 0x1be   :  { %v229_v0 = vmax.f32 %v213_v60, 0.0 }
 0x1bf   :  { %v230_v1 = vmax.f32 %v215_v63, 0.0  ;;  %v235_v2 = vmax.f32 %v227_v59, %v228_v62 }
 0x1c1   :  { %v218_v3 = vpop.f32.mrb[8].mxu1  ;;  %v236_v4 = vmax.f32 %v229_v0, %v230_v1 }
 0x1c2   :  { %v219_v5 = vadd.f32 %v218_v3, %v130_v52  ;;  %v220_v6 = vpop.f32.mrb[9].mxu1 }
 0x1c3   :  { %v221_v7 = vadd.f32 %v220_v6, %v134_v53  ;;  %v222_v8 = vpop.f32.mrb[10].mxu1  ;;  %v239_v9 = vpack.c.bf16 %v236_v4, %v235_v2 }
 0x1c4   :  { %v231_v10 = vmax.f32 %v219_v5, 0.0  ;;  %v223_v11 = vadd.f32 %v222_v8, %v130_v52  ;;  %v224_v12 = vpop.f32.mrb[11].mxu1 }
 0x1c5   :  { %v232_v13 = vmax.f32 %v221_v7, 0.0  ;;  %v225_v14 = vadd.f32 %v224_v12, %v134_v53  ;;  %528 = vmatprep.mubr.bf16.mxu0 %v239_v9 }
 0x1c6   :  { %v233_v15 = vmax.f32 %v223_v11, 0.0 }
 0x1c7   :  { %v237_v16 = vmax.f32 %v231_v10, %v232_v13  ;;  %v234_v17 = vmax.f32 %v225_v14, 0.0 }
 0x1c9   :  { %v238_v18 = vmax.f32 %v233_v15, %v234_v17 }
 0x1cb   :  { %v240_v19 = vpack.c.bf16 %v238_v18, %v237_v16 }
 0x1cd   :  { %529 = vmatmul.mubr.bf16.vlgmr.msra.gmra.mrb[0].mxu0 %v240_v19 }
 0x2a0   :  { %v530_v23 = vpop.f32.mrb[0].mxu0 }
 0x2a1   :  { %v352_v25 = vadd.f32 %v530_v23, %v260_v22  ;;  %v343_v27 = vpop.f32.mrb[1].mxu0 }
 0x2a2   :  { %v344_v28 = vadd.f32 %v343_v27, %v260_v22  ;;  %v531_v29 = vpop.f32.mrb[2].mxu0 }
 0x2a3   :  { %v355_v30 = vadd.f32 %v531_v29, %v260_v22  ;;  %v346_v31 = vpop.f32.mrb[3].mxu0  ;;  %v360_v33 = vmax.f32 %v352_v25, 0.0 }
 0x2a4   :  { %v347_v32 = vadd.f32 %v346_v31, %v260_v22  ;;  %v358_v35 = vmax.f32 %v344_v28, 0.0 }
 0x2a5   :  { %v361_v34 = vmax.f32 %v355_v30, 0.0 }
 0x2a6   :  { %v359_v36 = vmax.f32 %v347_v32, 0.0 }
 0x2a7   :  { %v363_v37 = vpack.c.bf16 %v361_v34, %v360_v33 }
 0x2a8   :  { %v362_v38 = vpack.c.bf16 %v359_v36, %v358_v35 }
 0x2aa   :  { %536 = vmatprep.mubr.msk.bf16.mxu1 %vm384_vm5, %v362_v38 }
 0x2ab   :  { %537 = vmatmul.mubr.msk.bf16.vlgmr.msra.gmra.mrb[12].mxu1 %vm384_vm5, %v363_v37 }
 0x37e   :  { %v538_v41 = vpop.f32.mrb[12].mxu1 }
 0x37f   :  { %v434_v42 = vadd.f32 %v538_v41, %v371_v40  ;;  %v425_v43 = vpop.f32.mrb[13].mxu1 }
 0x380   :  { %v426_v44 = vadd.f32 %v425_v43, %v371_v40  ;;  %v539_v45 = vpop.f32.mrb[14].mxu1 }
 0x381   :  { %v442_v46 = vmul.f32 0.5, %v434_v42  ;;  %v437_v47 = vadd.f32 %v539_v45, %v371_v40  ;;  %v428_v48 = vpop.f32.mrb[15].mxu1 }
 0x382   :  { %v440_v49 = vmul.f32 0.5, %v426_v44  ;;  %v429_v50 = vadd.f32 %v428_v48, %v371_v40 }
 0x383   :  { %561 = vtanh.f32 %v442_v46  ;;  %v443_v51 = vmul.f32 0.5, %v437_v47 }
 0x384   :  { %563 = vtanh.f32 %v440_v49  ;;  %v441_v52 = vmul.f32 0.5, %v429_v50 }
 0x385   :  { %565 = vtanh.f32 %v443_v51 }
 0x386   :  { %567 = vtanh.f32 %v441_v52 }
 0x38d   :  { %v562_v53 = vpop.eup %561 }
 0x38e   :  { %v564_v24 = vpop.eup %563  ;;  %v450_v54 = vadd.f32 1.0, %v562_v53 }
 0x38f   :  { %v566_v26 = vpop.eup %565  ;;  %v448_v55 = vadd.f32 1.0, %v564_v24 }
 0x390   :  { %v568_v56 = vpop.eup %567  ;;  %v454_v57 = vmul.f32 0.5, %v450_v54  ;;  %v451_v58 = vadd.f32 1.0, %v566_v26 }
 0x391   :  { %v452_v59 = vmul.f32 0.5, %v448_v55  ;;  %v449_v60 = vadd.f32 1.0, %v568_v56 }
 0x392   :  { %459 = vst.msk [vmem:[%s701_s6 + $0x10] sm:$0xff] %vm456_vm6, %v454_v57  ;;  %v455_v61 = vmul.f32 0.5, %v451_v58 }
 0x393   :  { %457 = vst.msk [vmem:[%s701_s6] sm:$0xff] %vm456_vm6, %v452_v59  ;;  %v453_v62 = vmul.f32 0.5, %v449_v60 }
 0x394   :  { %460 = vst.msk [vmem:[%s701_s6 + $0x18] sm:$0xff] %vm456_vm6, %v455_v61 }
 0x395   :  { %458 = vst.msk [vmem:[%s701_s6 + $0x8] sm:$0xff] %vm456_vm6, %v453_v62 }

</bundles_post_ra>
